<compile_context>
chip_gen: v7x
topology: tpu7x:2x2x1
jax: 0.10.0
libtpu: 0.0.40
codegen_flags: <defaults>
</compile_context>

<pallas_src>
import math
import functools

import jax
import jax.numpy as jnp
from jax import lax
from jax.experimental import pallas as pl
from jax.experimental.pallas import tpu as pltpu


def _arcface_kernel(feats_ref, inv_f_ref, weight_ref, inv_w_ref, targets_ref,
                    out_ref, *, s, m, eps):
    """Computes one (TN, TC) logits tile.

    feats_ref   : [TN, D]  f32/bf16  raw (un-normalized) feature rows
    inv_f_ref   : [TN, 1]  f32       1 / max(||feat_row||, 1e-12)   (precomputed)
    weight_ref  : [TC, D]  f32/bf16  raw weight rows for this class tile
    inv_w_ref   : [1, TC]  f32       1 / max(||weight_row||, 1e-12) (precomputed)
    targets_ref : [TN, 1]  i32       target class id per row
    out_ref     : [TN, TC] f32/bf16  s * (cos_theta with margin on target col)
    """
    tn, tc = out_ref.shape

    # Raw dot product on the MXU in bf16 with f32 accumulation (full MXU rate
    # on v5e/v6e/v7x).  astype is a no-op when the inputs are already bf16.
    raw = jnp.einsum(
        'nd,cd->nc',
        feats_ref[...].astype(jnp.bfloat16),
        weight_ref[...].astype(jnp.bfloat16),
        preferred_element_type=jnp.float32,
    )
    # Scale by precomputed reciprocal norms -> cos(theta), clip as reference.
    cos_theta = raw * inv_f_ref[...] * inv_w_ref[...]           # [TN, TC] f32
    cos_theta = jnp.clip(cos_theta, -1.0 + eps, 1.0 - eps)

    # One-hot of the target column *within this C tile*.  All-false for rows
    # whose target lives in another C tile -> those rows pass through.
    col0 = pl.program_id(0) * tc
    col_ids = col0 + lax.broadcasted_iota(jnp.int32, (tn, tc), 1)
    onehot = col_ids == targets_ref[...]                         # [TN, TC] bool

    # target_cos_theta = cos_theta[i, targets[i]]  (0 if target not in tile).
    c = jnp.sum(jnp.where(onehot, cos_theta, 0.0), axis=1, keepdims=True)

    # theta = acos(c); (theta < pi - m) <=> (c > -cos(m));
    # cos(theta + m) = c*cos(m) - sqrt(1 - c^2)*sin(m); else keep cos(theta).
    cos_m = math.cos(m)
    sin_m = math.sin(m)
    sin_theta = jnp.sqrt(jnp.maximum(1.0 - c * c, 0.0))          # theta in [0, pi]
    cos_theta_plus_m = c * cos_m - sin_theta * sin_m
    new_target = jnp.where(c > -cos_m, cos_theta_plus_m, c)      # [TN, 1]

    # Fused final select + scale; cast to the requested logits dtype.
    res = jnp.where(onehot, s * new_target, s * cos_theta)
    out_ref[...] = res.astype(out_ref.dtype)


def _round_up(x, mult):
    return -(-x // mult) * mult


def _vmem_budget_bytes():
    """Generation-aware VMEM limit (headroom below the physical capacity)."""
    cap = None
    try:
        cap = int(getattr(pltpu.get_tpu_info(), "vmem_capacity_bytes", 0)) or None
    except Exception:
        cap = None
    if cap is None:
        cap = 64 * 1024 * 1024            # conservative fallback (v7x-sized)
    if cap >= 96 * 1024 * 1024:           # v5e / v6e: 128 MiB physical
        return 100 * 1024 * 1024
    return 50 * 1024 * 1024               # v7x: 64 MiB physical, keep headroom


def arcface_linear(feats, weight, targets, *, s=32.0, m=0.5, eps=1e-7,
                   tn=None, tc=None, out_dtype=jnp.float32):
    """ArcFace margin logits.

    feats   : [N, D] f32 or bf16 (streamed as-is; bf16 halves HBM traffic)
    weight  : [C, D] f32 or bf16
    targets : [N]    int
    returns : [N, C] out_dtype   s * cos(theta (+ m on the target column))
    """
    N, D = feats.shape
    C, D2 = weight.shape
    assert D == D2
    assert targets.shape == (N,)

    feat_bytes = jnp.dtype(feats.dtype).itemsize
    w_bytes = jnp.dtype(weight.dtype).itemsize
    out_bytes = jnp.dtype(out_dtype).itemsize

    vmem_limit = _vmem_budget_bytes()
    budget = int(0.85 * vmem_limit)       # tile budget; rest = compiler scratch

    def tile_bytes(tn_, tc_):
        # Double-buffered VMEM footprint of one grid step (layout-padded).
        tn_p = _round_up(tn_, 16)
        tc_p = _round_up(tc_, 128)
        main = (tn_p * D * feat_bytes              # feats tile
                + tc_p * D * w_bytes               # weight tile
                + tn_p * tc_p * out_bytes)         # logits tile
        vecs = 2 * tn_p * 128 * 4 + 8 * tc_p * 4   # inv_f, targets, inv_w
        return 2 * (main + vecs)

    # --- tile selection ------------------------------------------------------
    # Column (class) tiles: lane-dense multiples of 128 (large 256-multiples
    # preferred for the 256-wide v6e/v7x MXU).  Row (batch) tiles: prefer full
    # N residency (gn == 1) so feats/targets are DMA'd once instead of gc times.
    if tc is None:
        tc_cands = [t for t in (2048, 1024, 512, 256, 128) if t <= C] or [C]
    else:
        tc_cands = [min(int(tc), C)]
    if tn is None:
        tn_cands = [N] + [t for t in (2048, 1024, 512, 256, 128, 64, 32, 16)
                          if t < N]
    else:
        tn_cands = [min(int(tn), N)]

    sel = None
    for tn_try in tn_cands:
        for tc_try in tc_cands:
            if tile_bytes(tn_try, tc_try) <= budget:
                sel = (tn_try, tc_try)
                break
        if sel is not None:
            break
    if sel is None:                        # extreme D: take smallest candidates
        sel = (tn_cands[-1], tc_cands[-1])
    tn, tc = sel

    # Layout constraints (sublane/lane multiples or full extent).
    sub = 16 if (feat_bytes == 2 or out_bytes == 2) else 8
    assert tn == N or tn % sub == 0, f"tn must be a multiple of {sub} (or == N)"
    assert tc == C or tc % 128 == 0, "tc must be a multiple of 128 (or == C)"

    gc = pl.cdiv(C, tc)
    gn = pl.cdiv(N, tn)

    # Reciprocal L2 norms hoisted out of the tiled kernel (otherwise the
    # cross-lane reduce over D would be recomputed for every (i, j) tile).
    # 1 / max(||x||, 1e-12) == rsqrt(max(||x||^2, 1e-24)); computed in f32.
    f32f = feats.astype(jnp.float32)
    f32w = weight.astype(jnp.float32)
    inv_f = lax.rsqrt(jnp.maximum(
        jnp.sum(f32f * f32f, axis=1, keepdims=True), 1e-24))         # [N, 1]
    inv_w = lax.rsqrt(jnp.maximum(
        jnp.sum(f32w * f32w, axis=1), 1e-24)).reshape(1, C)          # [1, C]
    tgt2d = targets.astype(jnp.int32).reshape(N, 1)

    kernel = functools.partial(_arcface_kernel, s=float(s), m=float(m),
                               eps=float(eps))

    # Grid: C tiles outer, N tiles inner.  The (large) weight tile is DMA'd
    # once per outer step and reused across every inner step; with the default
    # gn == 1 the feats/targets/inv_f blocks keep a constant block index and
    # are DMA'd exactly once.  Both axes "parallel": with gn == 1 the megacore
    # split necessarily lands on the C axis, halving per-core weight traffic.
    return pl.pallas_call(
        kernel,
        out_shape=jax.ShapeDtypeStruct((N, C), out_dtype),
        grid=(gc, gn),
        in_specs=[
            pl.BlockSpec((tn, D), lambda j, i: (i, 0)),   # feats
            pl.BlockSpec((tn, 1), lambda j, i: (i, 0)),   # 1/||feat||
            pl.BlockSpec((tc, D), lambda j, i: (j, 0)),   # weight
            pl.BlockSpec((1, tc), lambda j, i: (0, j)),   # 1/||weight||
            pl.BlockSpec((tn, 1), lambda j, i: (i, 0)),   # targets
        ],
        out_specs=pl.BlockSpec((tn, tc), lambda j, i: (i, j)),
        compiler_params=pltpu.CompilerParams(
            dimension_semantics=("parallel", "parallel"),
            vmem_limit_bytes=int(vmem_limit),
        ),
    )(feats, inv_f, weight, inv_w, tgt2d)


def _lower_s(C: int, Pw: float = 0.9) -> float:
    return (C - 1) / C * math.log((C - 1) * Pw / (1 - Pw))


def _reference(feats, weight, targets, *, s, m, eps):
    """Pure-JAX f32 reference matching ArcFaceLinear.forward_with_grad."""
    fn = feats / jnp.maximum(
        jnp.sqrt(jnp.sum(feats * feats, axis=1, keepdims=True)), 1e-12)
    wn = weight / jnp.maximum(
        jnp.sqrt(jnp.sum(weight * weight, axis=1, keepdims=True)), 1e-12)
    cos = jnp.clip(fn @ wn.T, -1.0 + eps, 1.0 - eps)
    rows = jnp.arange(feats.shape[0])
    c = cos[rows, targets]
    theta = jnp.arccos(c)
    mask = (theta < (math.pi - m)).astype(jnp.float32)
    new = jnp.cos(theta + mask * m)
    cos = cos.at[rows, targets].set(new)
    return s * cos


if __name__ == "__main__":
    s, m = 32.0, 0.5
    keys = jax.random.split(jax.random.PRNGKey(0), 6)

    # --- test 1: f32 in / f32 out, auto tiles (batch-resident, gn == 1) -----
    N, D, C = 16, 64, 512
    assert s > _lower_s(C), "norm factor s below lower bound"
    feats = jax.random.normal(keys[0], (N, D), dtype=jnp.float32)
    bound = math.sqrt(6.0 / (C + D))      # deterministic xavier_uniform_
    weight = jax.random.uniform(keys[1], (C, D), dtype=jnp.float32,
                                minval=-bound, maxval=bound)
    targets = jax.random.randint(keys[2], (N,), 0, C, dtype=jnp.int32)
    ref = _reference(feats, weight, targets, s=s, m=m, eps=1e-7)

    out1 = arcface_linear(feats, weight, targets, s=s, m=m)
    jax.block_until_ready(out1)
    assert out1.shape == (N, C) and out1.dtype == jnp.float32
    assert float(jnp.max(jnp.abs(out1 - ref))) < 0.5, "mismatch (auto tiles)"

    # --- test 2: explicit small tiles -> real 2x2 grid (row + col tiling) ---
    out2 = arcface_linear(feats, weight, targets, s=s, m=m, tn=8, tc=256)
    jax.block_until_ready(out2)
    assert float(jnp.max(jnp.abs(out2 - ref))) < 0.5, "mismatch (2x2 grid)"

    # --- test 3: bf16 in / bf16 out, non-divisible N & C, auto tiles --------
    N3, D3, C3 = 10, 48, 300
    assert s > _lower_s(C3)
    f3 = jax.random.normal(keys[3], (N3, D3), dtype=jnp.float32).astype(jnp.bfloat16)
    b3 = math.sqrt(6.0 / (C3 + D3))
    w3 = jax.random.uniform(keys[4], (C3, D3), dtype=jnp.float32,
                            minval=-b3, maxval=b3).astype(jnp.bfloat16)
    t3 = jax.random.randint(keys[5], (N3,), 0, C3, dtype=jnp.int32)
    out3 = arcface_linear(f3, w3, t3, s=s, m=m, out_dtype=jnp.bfloat16)
    jax.block_until_ready(out3)
    assert out3.shape == (N3, C3) and out3.dtype == jnp.bfloat16
    ref3 = _reference(f3.astype(jnp.float32), w3.astype(jnp.float32), t3,
                      s=s, m=m, eps=1e-7)
    assert float(jnp.max(jnp.abs(out3.astype(jnp.float32) - ref3))) < 0.5, \
        "mismatch (bf16, ragged)"

    print("KERNEL_OK")
</pallas_src>

<mosaic_0001>
module attributes {stable_mosaic.version = 11 : i64} {
  func.func @_arcface_kernel(%arg0: i32, %arg1: i32, %arg2: memref<16x64xf32, #tpu.memory_space<vmem>>, %arg3: memref<16x1xf32, #tpu.memory_space<vmem>>, %arg4: memref<512x64xf32, #tpu.memory_space<vmem>>, %arg5: memref<1x512xf32, #tpu.memory_space<vmem>>, %arg6: memref<16x1xi32, #tpu.memory_space<vmem>>, %arg7: memref<16x512xf32, #tpu.memory_space<vmem>>) attributes {dimension_semantics = [#tpu.dimension_semantics<parallel>, #tpu.dimension_semantics<parallel>], iteration_bounds = array<i64: 1, 1>, scalar_prefetch = 0 : i64, scratch_operands = 0 : i64, tpu.core_type = #tpu.core_type<tc>, window_params = [{transform_indices = @transform_0, window_bounds = array<i64: 16, 64>}, {transform_indices = @transform_1, window_bounds = array<i64: 16, 1>}, {transform_indices = @transform_2, window_bounds = array<i64: 512, 64>}, {transform_indices = @transform_3, window_bounds = array<i64: 1, 512>}, {transform_indices = @transform_4, window_bounds = array<i64: 16, 1>}, {transform_indices = @transform_5, window_bounds = array<i64: 16, 512>}]} {
    %c0 = arith.constant 0 : index
    %c0_0 = arith.constant 0 : index
    %0 = vector.load %arg2[%c0, %c0_0] : memref<16x64xf32, #tpu.memory_space<vmem>>, vector<16x64xf32>
    %1 = arith.truncf %0 : vector<16x64xf32> to vector<16x64xbf16>
    %c0_1 = arith.constant 0 : index
    %c0_2 = arith.constant 0 : index
    %2 = vector.load %arg4[%c0_1, %c0_2] : memref<512x64xf32, #tpu.memory_space<vmem>>, vector<512x64xf32>
    %3 = arith.truncf %2 : vector<512x64xf32> to vector<512x64xbf16>
    "tpu.trace_start"() <{level = 10 : i32, message = "nd,cd->nc"}> : () -> ()
    %cst = arith.constant dense<0.000000e+00> : vector<16x512xf32>
    %4 = tpu.matmul %1, %3, %cst {dimension_numbers = #tpu.dot_dimension_numbers<[1], [1], [0], [0], [0, 0, 1, 0], [], []>} : vector<16x64xbf16>, vector<512x64xbf16>, vector<16x512xf32> -> vector<16x512xf32>
    "tpu.trace_stop"() : () -> ()
    %c0_3 = arith.constant 0 : index
    %c0_4 = arith.constant 0 : index
    %5 = vector.load %arg3[%c0_3, %c0_4] : memref<16x1xf32, #tpu.memory_space<vmem>>, vector<16x1xf32>
    %6 = vector.broadcast %5 : vector<16x1xf32> to vector<16x512xf32>
    %7 = arith.mulf %4, %6 : vector<16x512xf32>
    %c0_5 = arith.constant 0 : index
    %c0_6 = arith.constant 0 : index
    %8 = vector.load %arg5[%c0_5, %c0_6] : memref<1x512xf32, #tpu.memory_space<vmem>>, vector<1x512xf32>
    %9 = vector.broadcast %8 : vector<1x512xf32> to vector<16x512xf32>
    %10 = arith.mulf %7, %9 : vector<16x512xf32>
    %cst_7 = arith.constant -0.99999988 : f32
    %cst_8 = arith.constant 0.99999988 : f32
    %11 = vector.broadcast %cst_7 : f32 to vector<16x512xf32>
    %12 = arith.maximumf %11, %10 : vector<16x512xf32>
    %13 = vector.broadcast %cst_8 : f32 to vector<16x512xf32>
    %14 = arith.minimumf %13, %12 : vector<16x512xf32>
    %c512_i32 = arith.constant 512 : i32
    %15 = arith.muli %arg0, %c512_i32 : i32
    %16 = tpu.iota {dimensions = array<i32: 1>} : vector<16x512xi32>
    %17 = vector.broadcast %15 : i32 to vector<16x512xi32>
    %18 = arith.addi %17, %16 : vector<16x512xi32>
    %c0_9 = arith.constant 0 : index
    %c0_10 = arith.constant 0 : index
    %19 = vector.load %arg6[%c0_9, %c0_10] : memref<16x1xi32, #tpu.memory_space<vmem>>, vector<16x1xi32>
    %20 = vector.broadcast %19 : vector<16x1xi32> to vector<16x512xi32>
    %21 = arith.cmpi eq, %18, %20 : vector<16x512xi32>
    %cst_11 = arith.constant 0.000000e+00 : f32
    %22 = vector.broadcast %cst_11 : f32 to vector<16x512xf32>
    %23 = arith.select %21, %14, %22 : vector<16x512xi1>, vector<16x512xf32>
    %cst_12 = arith.constant dense<0.000000e+00> : vector<16xf32>
    %24 = vector.multi_reduction <add>, %23, %cst_12 [1] : vector<16x512xf32> to vector<16xf32>
    %25 = vector.shape_cast %24 : vector<16xf32> to vector<16x1xf32>
    %26 = arith.mulf %25, %25 : vector<16x1xf32>
    %cst_13 = arith.constant 1.000000e+00 : f32
    %27 = vector.broadcast %cst_13 : f32 to vector<16x1xf32>
    %28 = arith.subf %27, %26 : vector<16x1xf32>
    %cst_14 = arith.constant 0.000000e+00 : f32
    %29 = vector.broadcast %cst_14 : f32 to vector<16x1xf32>
    %30 = arith.maximumf %28, %29 : vector<16x1xf32>
    %31 = math.sqrt %30 : vector<16x1xf32>
    %cst_15 = arith.constant 0.87758255 : f32
    %32 = vector.broadcast %cst_15 : f32 to vector<16x1xf32>
    %33 = arith.mulf %25, %32 : vector<16x1xf32>
    %cst_16 = arith.constant 0.47942555 : f32
    %34 = vector.broadcast %cst_16 : f32 to vector<16x1xf32>
    %35 = arith.mulf %31, %34 : vector<16x1xf32>
    %36 = arith.subf %33, %35 : vector<16x1xf32>
    %cst_17 = arith.constant -0.87758255 : f32
    %37 = vector.broadcast %cst_17 : f32 to vector<16x1xf32>
    %38 = arith.cmpf ogt, %25, %37 : vector<16x1xf32>
    %39 = arith.select %38, %36, %25 : vector<16x1xi1>, vector<16x1xf32>
    %cst_18 = arith.constant 3.200000e+01 : f32
    %40 = vector.broadcast %cst_18 : f32 to vector<16x1xf32>
    %41 = arith.mulf %40, %39 : vector<16x1xf32>
    %cst_19 = arith.constant 3.200000e+01 : f32
    %42 = vector.broadcast %cst_19 : f32 to vector<16x512xf32>
    %43 = arith.mulf %42, %14 : vector<16x512xf32>
    %44 = vector.shape_cast %41 : vector<16x1xf32> to vector<16x1xf32>
    %45 = vector.broadcast %44 : vector<16x1xf32> to vector<16x512xf32>
    %46 = arith.select %21, %45, %43 : vector<16x512xi1>, vector<16x512xf32>
    %c0_20 = arith.constant 0 : index
    %c0_21 = arith.constant 0 : index
    %47 = vector.load %arg7[%c0_20, %c0_21] : memref<16x512xf32, #tpu.memory_space<vmem>>, vector<16x512xf32>
    tpu.vector_store %arg7[%c0_20, %c0_21], %46 {strides = array<i32>} : memref<16x512xf32, #tpu.memory_space<vmem>>, vector<16x512xf32>,
    return
  }
  func.func @transform_0(%arg0: i32, %arg1: i32) -> (i32, i32) {
    %c0_i32 = arith.constant 0 : i32
    %c0_i32_0 = arith.constant 0 : i32
    return %arg1, %c0_i32 : i32, i32
  }
  func.func @transform_1(%arg0: i32, %arg1: i32) -> (i32, i32) {
    %c0_i32 = arith.constant 0 : i32
    %c0_i32_0 = arith.constant 0 : i32
    return %arg1, %c0_i32 : i32, i32
  }
  func.func @transform_2(%arg0: i32, %arg1: i32) -> (i32, i32) {
    %c0_i32 = arith.constant 0 : i32
    %c0_i32_0 = arith.constant 0 : i32
    return %arg0, %c0_i32 : i32, i32
  }
  func.func @transform_3(%arg0: i32, %arg1: i32) -> (i32, i32) {
    %c0_i32 = arith.constant 0 : i32
    %c0_i32_0 = arith.constant 0 : i32
    return %c0_i32, %arg0 : i32, i32
  }
  func.func @transform_4(%arg0: i32, %arg1: i32) -> (i32, i32) {
    %c0_i32 = arith.constant 0 : i32
    %c0_i32_0 = arith.constant 0 : i32
    return %arg1, %c0_i32 : i32, i32
  }
  func.func @transform_5(%arg0: i32, %arg1: i32) -> (i32, i32) {
    %c0_i32 = arith.constant 0 : i32
    return %arg1, %arg0 : i32, i32
  }
}

</mosaic_0001>

<bundles_post_ra>
// kernel: tpu_custom_call.1
= control target key start
LH: loop header
LB: loop body
LE: loop exit
PB: predicated region body
PF: predicated region fallthrough
CT: control target
= control target key end

     0   :  { %vm121_vm0 = vcmask 523264   ;;  %v586_v7 = vmov 0   ;;  %s1014_s0 = inlined_call_operand.vmem [shape: f32[16,64], index: 0, kind: input, shape index: {}]   ;;  %s1015_s1 = inlined_call_operand.vmem [shape: f32[16,1], index: 1, kind: input, shape index: {}]   ;;  %s1016_s2 = inlined_call_operand.vmem [shape: f32[512,64], index: 2, kind: input, shape index: {}]   ;;  %s1017_s3 = inlined_call_operand.vmem [shape: f32[1,512], index: 3, kind: input, shape index: {}]   ;;  %s1018_s4 = inlined_call_operand.vmem [shape: s32[16,1], index: 4, kind: input, shape index: {}]   ;;  %s1019_s5 = inlined_call_operand.hbm [shape: f32[16,512], index: 5, kind: output, shape index: {}]  }
   0x1   :  { %v41_v0 = vld [vmem:[%s1016_s2 + $0x80] sm:$0xff]  ;;  %v42_v1 = vld [vmem:[%s1016_s2 + $0x88] sm:$0xff]  ;;  %556 = vset.pattern.permute.xlu0 %v586_v7  ;;  %557 = vset.pattern.permute.xlu1 %v586_v7  ;;  %v43_v12 = vld [vmem:[%s1016_s2 + $0x90] sm:$0xff] }
   0x2   :  { %v73_v2 = vld [vmem:[%s1016_s2 + $0x180] sm:$0xff]  ;;  %v97_v3 = vpack.c.bf16 %v42_v1, %v41_v0  ;;  %v74_v4 = vld [vmem:[%s1016_s2 + $0x188] sm:$0xff]  ;;  %v44_v14 = vld [vmem:[%s1016_s2 + $0x98] sm:$0xff] }
   0x3   :  { %v25_v5 = vld [vmem:[%s1016_s2] sm:$0xff]  ;;  %v26_v6 = vld [vmem:[%s1016_s2 + $0x8] sm:$0xff]  ;;  %v113_v8 = vpack.c.bf16 %v74_v4, %v73_v2  ;;  %v75_v15 = vld [vmem:[%s1016_s2 + $0x190] sm:$0xff]  ;;  %v98_v18 = vpack.c.bf16 %v44_v14, %v43_v12 }
   0x4   :  { %v89_v9 = vpack.c.bf16 %v26_v6, %v25_v5  ;;  %v57_v10 = vld [vmem:[%s1016_s2 + $0x100] sm:$0xff]  ;;  %v58_v11 = vld [vmem:[%s1016_s2 + $0x108] sm:$0xff]  ;;  %536 = vmatprep.subr.msk.bf16.mxu0 %vm121_vm0, %v97_v3  ;;  %v76_v16 = vld [vmem:[%s1016_s2 + $0x198] sm:$0xff] }
   0x5   :  { %v105_v13 = vpack.c.bf16 %v58_v11, %v57_v10  ;;  %544 = vmatprep.subr.msk.bf16.mxu1 %vm121_vm0, %v113_v8  ;;  %v114_v19 = vpack.c.bf16 %v76_v16, %v75_v15  ;;  %v27_v20 = vld [vmem:[%s1016_s2 + $0x10] sm:$0xff]  ;;  %v28_v21 = vld [vmem:[%s1016_s2 + $0x18] sm:$0xff]  ;;  %v45_v27 = vld [vmem:[%s1016_s2 + $0xa0] sm:$0xff] }
   0x6   :  { %v126_v17 = vsel %vm121_vm0, %v89_v9, 0  ;;  %v59_v22 = vld [vmem:[%s1016_s2 + $0x110] sm:$0xff]  ;;  %v60_v24 = vld [vmem:[%s1016_s2 + $0x118] sm:$0xff]  ;;  %v90_v25 = vpack.c.bf16 %v28_v21, %v27_v20  ;;  %v46_v28 = vld [vmem:[%s1016_s2 + $0xa8] sm:$0xff] }
   0x7   :  { %501 = vmatpush3.bf16.xpose.msra.mxu0 %v126_v17  ;;  %v174_v23 = vsel %vm121_vm0, %v105_v13, 0  ;;  %v106_v26 = vpack.c.bf16 %v60_v24, %v59_v22  ;;  %v77_v29 = vld [vmem:[%s1016_s2 + $0x1a0] sm:$0xff]  ;;  %v78_v30 = vld [vmem:[%s1016_s2 + $0x1a8] sm:$0xff]  ;;  %v99_v32 = vpack.c.bf16 %v46_v28, %v45_v27  ;;  %v47_v41 = vld [vmem:[%s1016_s2 + $0xb0] sm:$0xff] }
   0x8   :  { %519 = vmatpush3.bf16.xpose.msra.mxu1 %v174_v23  ;;  %537 = vmatprep.subr.msk.bf16.mxu0 %vm121_vm0, %v98_v18  ;;  %v129_v31 = vsel %vm121_vm0, %v90_v25, 0  ;;  %v115_v34 = vpack.c.bf16 %v78_v30, %v77_v29  ;;  %v29_v35 = vld [vmem:[%s1016_s2 + $0x20] sm:$0xff]  ;;  %v30_v36 = vld [vmem:[%s1016_s2 + $0x28] sm:$0xff]  ;;  %v48_v42 = vld [vmem:[%s1016_s2 + $0xb8] sm:$0xff] }
   0x9   :  { %545 = vmatprep.subr.msk.bf16.mxu1 %vm121_vm0, %v114_v19  ;;  %v177_v33 = vsel %vm121_vm0, %v106_v26, 0  ;;  %v61_v37 = vld [vmem:[%s1016_s2 + $0x120] sm:$0xff]  ;;  %v62_v38 = vld [vmem:[%s1016_s2 + $0x128] sm:$0xff]  ;;  %v91_v39 = vpack.c.bf16 %v30_v36, %v29_v35  ;;  %v79_v43 = vld [vmem:[%s1016_s2 + $0x1b0] sm:$0xff]  ;;  %v100_v46 = vpack.c.bf16 %v48_v42, %v47_v41 }
   0xa   :  { %v107_v40 = vpack.c.bf16 %v62_v38, %v61_v37  ;;  %v80_v44 = vld [vmem:[%s1016_s2 + $0x1b8] sm:$0xff]  ;;  %v31_v49 = vld [vmem:[%s1016_s2 + $0x30] sm:$0xff]  ;;  %v22_v53 = vld [vmem:[%s1014_s0] sm:$0xff] }
   0xb   :  { %v132_v45 = vsel %vm121_vm0, %v91_v39, 0  ;;  %v116_v48 = vpack.c.bf16 %v80_v44, %v79_v43  ;;  %v32_v50 = vld [vmem:[%s1016_s2 + $0x38] sm:$0xff]  ;;  %v63_v51 = vld [vmem:[%s1016_s2 + $0x130] sm:$0xff]  ;;  %v23_v54 = vld [vmem:[%s1014_s0 + $0x8] sm:$0xff] }
   0xc   :  { %v180_v47 = vsel %vm121_vm0, %v107_v40, 0  ;;  %v64_v52 = vld [vmem:[%s1016_s2 + $0x138] sm:$0xff]  ;;  %v92_v55 = vpack.c.bf16 %v32_v50, %v31_v49  ;;  %v735_v56 = vpack.c.bf16 %v23_v54, %v22_v53  ;;  %v307_v57 = vld [vmem:[%s1015_s1] sm:$0xff]  ;;  %v50_v61 = vld [vmem:[%s1016_s2 + $0xc8] sm:$0xff] }
   0xd   :  { %v384_v58 = vld [vmem:[%s1018_s4] sm:$0xff]  ;;  %v108_v59 = vpack.c.bf16 %v64_v52, %v63_v51  ;;  %311 = vperm.xlu0 %556, %v307_v57  }
   0xe   :  { %v49_v60 = vld [vmem:[%s1016_s2 + $0xc0] sm:$0xff] }
   0xf   :  { %503 = vmatpush3.bf16.xpose.msra.mxu0 %v129_v31 }
  0x10   :  { %521 = vmatpush3.bf16.xpose.msra.mxu1 %v177_v33  ;;  %538 = vmatprep.subr.msk.bf16.mxu0 %vm121_vm0, %v99_v32 }
  0x11   :  { %546 = vmatprep.subr.msk.bf16.mxu1 %vm121_vm0, %v115_v34 }
  0x17   :  { %505 = vmatpush3.bf16.xpose.msra.mxu0 %v132_v45 }
  0x18   :  { %523 = vmatpush3.bf16.xpose.msra.mxu1 %v180_v47  ;;  %539 = vmatprep.subr.msk.bf16.mxu0 %vm121_vm0, %v100_v46 }
  0x19   :  { %547 = vmatprep.subr.msk.bf16.mxu1 %vm121_vm0, %v116_v48 }
  0x1a   :  { %10 = vsyncpa [#allocation3], 0  ;;  %v81_v62 = vld [vmem:[%s1016_s2 + $0x1c0] sm:$0xff]  ;;  %v82_v63 = vld [vmem:[%s1016_s2 + $0x1c8] sm:$0xff]  ;;  %516 = vmatprep.mubr.msk.bf16.mxu0 %vm121_vm0, %v735_v56  ;;  %534 = vmatprep.mubr.msk.bf16.mxu1 %vm121_vm0, %v735_v56  ;;  %v135_v1 = vsel %vm121_vm0, %v92_v55, 0  ;;  %v101_v2 = vpack.c.bf16 %v50_v61, %v49_v60  ;;  %v183_v4 = vsel %vm121_vm0, %v108_v59, 0  ;;  %v329_v57 = vlaneseq }
  0x1b   :  { %v308_v0 = vld [vmem:[%s1015_s1 + $0x8] sm:$0xff]  ;;  %387 = vperm.xlu1 %557, %v384_v58   ;;  %v117_v5 = vpack.c.bf16 %v82_v63, %v81_v62  ;;  %v33_v6 = vld [vmem:[%s1016_s2 + $0x40] sm:$0xff]  ;;  %v51_v12 = vld [vmem:[%s1016_s2 + $0xd0] sm:$0xff] }
  0x1c   :  { %v385_v3 = vld [vmem:[%s1018_s4 + $0x8] sm:$0xff]  ;;  %316 = vperm.xlu0 %556, %v308_v0   ;;  %v65_v8 = vld [vmem:[%s1016_s2 + $0x140] sm:$0xff]  ;;  %v52_v13 = vld [vmem:[%s1016_s2 + $0xd8] sm:$0xff]  ;;  %v330_v58 = vshrl.u32 %v329_v57, 7 }
  0x1d   :  { %v34_v7 = vld [vmem:[%s1016_s2 + $0x48] sm:$0xff]  ;;  %v83_v14 = vld [vmem:[%s1016_s2 + $0x1d0] sm:$0xff]  ;;  %v84_v15 = vld [vmem:[%s1016_s2 + $0x1d8] sm:$0xff]  ;;  %v102_v17 = vpack.c.bf16 %v52_v13, %v51_v12 }
  0x1e   :  { %v66_v9 = vld [vmem:[%s1016_s2 + $0x148] sm:$0xff]  ;;  %v93_v10 = vpack.c.bf16 %v34_v7, %v33_v6  ;;  %v118_v19 = vpack.c.bf16 %v84_v15, %v83_v14  ;;  %v35_v20 = vld [vmem:[%s1016_s2 + $0x50] sm:$0xff]  ;;  %v36_v21 = vld [vmem:[%s1016_s2 + $0x58] sm:$0xff]  ;;  %v331_v60 = vsub.s32 0, %v330_v58  ;;  %v339_v62 = vsub.s32 2, %v330_v58 }
  0x1f   :  { %507 = vmatpush3.bf16.xpose.msra.mxu0 %v135_v1  ;;  %390 = vperm.xlu1 %557, %v385_v3   ;;  %v109_v11 = vpack.c.bf16 %v66_v9, %v65_v8  ;;  %v67_v22 = vld [vmem:[%s1016_s2 + $0x150] sm:$0xff]  ;;  %v68_v23 = vld [vmem:[%s1016_s2 + $0x158] sm:$0xff]  ;;  %v94_v24 = vpack.c.bf16 %v36_v21, %v35_v20  ;;  %v53_v26 = vld [vmem:[%s1016_s2 + $0xe0] sm:$0xff]  ;;  %v335_v63 = vsub.s32 1, %v330_v58  ;;  %v343_v0 = vsub.s32 3, %v330_v58 }
  0x20   :  { %525 = vmatpush3.bf16.xpose.msra.mxu1 %v183_v4  ;;  %540 = vmatprep.subr.msk.bf16.mxu0 %vm121_vm0, %v101_v2  ;;  %v138_v16 = vsel %vm121_vm0, %v93_v10, 0  ;;  %v110_v25 = vpack.c.bf16 %v68_v23, %v67_v22  ;;  %v54_v27 = vld [vmem:[%s1016_s2 + $0xe8] sm:$0xff]  ;;  %v85_v28 = vld [vmem:[%s1016_s2 + $0x1e0] sm:$0xff]  ;;  %v55_v40 = vld [vmem:[%s1016_s2 + $0xf0] sm:$0xff]  ;;  %v875_v1 = vand.u32 127, %v329_v57 }
  0x21   :  { %548 = vmatprep.subr.msk.bf16.mxu1 %vm121_vm0, %v117_v5  ;;  %v186_v18 = vsel %vm121_vm0, %v109_v11, 0  ;;  %v86_v29 = vld [vmem:[%s1016_s2 + $0x1e8] sm:$0xff]  ;;  %v141_v30 = vsel %vm121_vm0, %v94_v24, 0  ;;  %v103_v31 = vpack.c.bf16 %v54_v27, %v53_v26  ;;  %v37_v34 = vld [vmem:[%s1016_s2 + $0x60] sm:$0xff]  ;;  %v56_v41 = vld [vmem:[%s1016_s2 + $0xf8] sm:$0xff] }
  0x22   :  { %v189_v32 = vsel %vm121_vm0, %v110_v25, 0  ;;  %v119_v33 = vpack.c.bf16 %v86_v29, %v85_v28  ;;  %v38_v35 = vld [vmem:[%s1016_s2 + $0x68] sm:$0xff]  ;;  %v69_v36 = vld [vmem:[%s1016_s2 + $0x160] sm:$0xff]  ;;  %v87_v42 = vld [vmem:[%s1016_s2 + $0x1f0] sm:$0xff]  ;;  %v104_v45 = vpack.c.bf16 %v56_v41, %v55_v40  ;;  %v880_v11 = vadd.s32 128, %v875_v1 }
  0x23   :  { %v70_v37 = vld [vmem:[%s1016_s2 + $0x168] sm:$0xff]  ;;  %v95_v38 = vpack.c.bf16 %v38_v35, %v37_v34  ;;  %v88_v43 = vld [vmem:[%s1016_s2 + $0x1f8] sm:$0xff]  ;;  %v39_v48 = vld [vmem:[%s1016_s2 + $0x70] sm:$0xff]  ;;  %v887_v21 = vadd.s32 256, %v875_v1 }
  0x24   :  { %v111_v39 = vpack.c.bf16 %v70_v37, %v69_v36  ;;  %v120_v47 = vpack.c.bf16 %v88_v43, %v87_v42  ;;  %v40_v49 = vld [vmem:[%s1016_s2 + $0x78] sm:$0xff]  ;;  %v71_v50 = vld [vmem:[%s1016_s2 + $0x170] sm:$0xff]  ;;  %v327_v61 = vld [vmem:[%s1017_s3] sm:$0xf]  ;;  %s587_s3 = smov [#allocation2]  }
  0x25   :  { %v144_v44 = vsel %vm121_vm0, %v95_v38, 0  ;;  %v72_v51 = vld [vmem:[%s1016_s2 + $0x178] sm:$0xff]  ;;  %v96_v52 = vpack.c.bf16 %v40_v49, %v39_v48  ;;  %v332_v3 = vrot.slane %v327_v61, %v331_v60  ;;  %v340_v6 = vrot.slane %v327_v61, %v339_v62  ;;  %s479_s27 = sshll.u32 %s587_s3, 4  ;;  %s480_s27 = int_to_ptr.vmem [resolvable:$true] %s479_s27 }
  0x26   :  { %v192_v46 = vsel %vm121_vm0, %v111_v39, 0  ;;  %v112_v53 = vpack.c.bf16 %v72_v51, %v71_v50  ;;  %v344_v10 = vrot.slane %v327_v61, %v343_v0  ;;  %v920_v39 = vadd.s32 384, %v875_v1  ;;  %s562_s28 = scalar_lea.vmem %s480_s27, 1024  ;;  %p567_p1 = scmp.lt.s32.totalorder %s480_s27, %s480_s27 }
  0x27   :  { %509 = vmatpush3.bf16.xpose.msra.mxu0 %v138_v16  ;;  %v147_v54 = vsel %vm121_vm0, %v96_v52, 0  ;;  %p563_p0 = scmp.ne.s32.totalorder %s480_s27, %s562_s28  ;;  %p568_p2 = scmp.lt.s32.totalorder %s562_s28, %s562_s28 }
  0x28   :  { %527 = vmatpush3.bf16.xpose.msra.mxu1 %v186_v18  ;;  %541 = vmatprep.subr.msk.bf16.mxu0 %vm121_vm0, %v102_v17  ;;  %v195_v55 = vsel %vm121_vm0, %v112_v53, 0 }
  0x29   :  { %549 = vmatprep.subr.msk.bf16.mxu1 %vm121_vm0, %v118_v19  ;;  %p569_p3 = por %p568_p2, %p567_p1 }
  0x2b   :  { %p570_p4 = pnand %p569_p3, %p563_p0 }
  0x2f   :  { %511 = vmatpush3.bf16.xpose.msra.mxu0 %v141_v30 }
  0x30   :  { %529 = vmatpush3.bf16.xpose.msra.mxu1 %v189_v32  ;;  %542 = vmatprep.subr.msk.bf16.mxu0 %vm121_vm0, %v103_v31 }
  0x31   :  { %550 = vmatprep.subr.msk.bf16.mxu1 %vm121_vm0, %v119_v33 }
  0x37   :  { %513 = vmatpush3.bf16.xpose.msra.mxu0 %v144_v44 }
  0x38   :  { %531 = vmatpush3.bf16.xpose.msra.mxu1 %v192_v46  ;;  %543 = vmatprep.subr.msk.bf16.mxu0 %vm121_vm0, %v104_v45 }
  0x39   :  { %551 = vmatprep.subr.msk.bf16.mxu1 %vm121_vm0, %v120_v47 }
  0x3f   :  { %515 = vmatpush3.bf16.xpose.msra.mxu0 %v147_v54 }
  0x40   :  { %533 = vmatpush3.bf16.xpose.msra.mxu1 %v195_v55 }
  0x46   :  { %517 = vmatmul.mubr.msk.bf16.vlgmr.msra.gmra.mrb[0].mxu0 %vm121_vm0, %v735_v56 }
  0x47   :  { %535 = vmatmul.mubr.msk.bf16.vlgmr.msra.gmra.mrb[0].mxu1 %vm121_vm0, %v735_v56  ;;  %v336_v56 = vrot.slane %v327_v61, %v335_v63 }
  0x8c   :  { %v312_v59 = vpop.permute.xlu0 %311 }
  0x9a   :  { %v877_v2 = vpop.permute.xlu1 %387 }
  0x9b   :  { %v317_v4 = vpop.permute.xlu0 %316  ;;  %vm392_vm1 = vcmp.eq.s32.totalorder %v875_v1, %v877_v2  ;;  %vm393_vm2 = vcmp.eq.s32.totalorder %v880_v11, %v877_v2  ;;  %vm394_vm3 = vcmp.eq.s32.totalorder %v887_v21, %v877_v2  ;;  %vm395_vm6 = vcmp.eq.s32.totalorder %v920_v39, %v877_v2 }
  0x9e   :  { %v912_v37 = vpop.permute.xlu1 %390 }
  0x9f   :  { %vm396_vm4 = vcmp.eq.s32.totalorder %v875_v1, %v912_v37  ;;  %vm397_vm5 = vcmp.eq.s32.totalorder %v880_v11, %v912_v37  ;;  %vm398_vm7 = vcmp.eq.s32.totalorder %v887_v21, %v912_v37  ;;  %vm399_vm8 = vcmp.eq.s32.totalorder %v920_v39, %v912_v37 }
 0x119   :  { %v255_v5 = vpop.f32.mrb[0].mxu0 }
 0x11a   :  { %v319_v7 = vmul.f32 %v312_v59, %v255_v5  ;;  %v298_v8 = vpop.f32.mrb[0].mxu1  ;;  %v257_v9 = vpop.f32.mrb[1].mxu0 }
 0x11b   :  { %v321_v12 = vmul.f32 %v312_v59, %v298_v8  ;;  %v320_v13 = vmul.f32 %v312_v59, %v257_v9  ;;  %v300_v14 = vpop.f32.mrb[1].mxu1  ;;  %v259_v15 = vpop.f32.mrb[2].mxu0 }
 0x11c   :  { %v884_v16 = vmul.f32 %v332_v3, %v319_v7  ;;  %v322_v17 = vmul.f32 %v312_v59, %v300_v14  ;;  %v323_v18 = vmul.f32 %v317_v4, %v259_v15  ;;  %v302_v19 = vpop.f32.mrb[2].mxu1  ;;  %v261_v20 = vpop.f32.mrb[3].mxu0 }
 0x11d   :  { %v889_v22 = vmul.f32 %v340_v6, %v321_v12  ;;  %v891_v23 = vmul.f32 %v336_v56, %v320_v13  ;;  %v325_v24 = vmul.f32 %v317_v4, %v302_v19  ;;  %v324_v25 = vmul.f32 %v317_v4, %v261_v20  ;;  %v304_v26 = vpop.f32.mrb[3].mxu1 }
 0x11e   :  { %v492_v27 = vclamps-f32 %v884_v16, 0.9999999  ;;  %v894_v28 = vmul.f32 %v344_v10, %v322_v17  ;;  %v896_v29 = vmul.f32 %v332_v3, %v323_v18  ;;  %v326_v30 = vmul.f32 %v317_v4, %v304_v26 }
 0x11f   :  { %v493_v31 = vclamps-f32 %v891_v23, 0.9999999  ;;  %v899_v32 = vmul.f32 %v340_v6, %v325_v24  ;;  %v901_v33 = vmul.f32 %v336_v56, %v324_v25  ;;  %v494_v35 = vclamps-f32 %v889_v22, 0.9999999 }
 0x120   :  { %v400_v34 = vsel %vm392_vm1, %v492_v27, 0.0  ;;  %v496_v36 = vclamps-f32 %v896_v29, 0.9999999  ;;  %v495_v40 = vclamps-f32 %v894_v28, 0.9999999  ;;  %v927_v43 = vmul.f32 %v344_v10, %v326_v30 }
 0x121   :  { %v401_v38 = vsel %vm393_vm2, %v493_v31, 0.0  ;;  %v498_v41 = vclamps-f32 %v899_v32, 0.9999999  ;;  %v497_v42 = vclamps-f32 %v901_v33, 0.9999999  ;;  %v402_v46 = vsel %vm394_vm3, %v494_v35, 0.0 }
 0x122   :  { %v408_v44 = vadd.f32 %v401_v38, %v400_v34  ;;  %v499_v45 = vclamps-f32 %v927_v43, 0.9999999  ;;  %v404_v47 = vsel %vm396_vm4, %v496_v36, 0.0  ;;  %v403_v51 = vsel %vm395_vm6, %v495_v40, 0.0 }
 0x123   :  { %v405_v48 = vsel %vm397_vm5, %v497_v42, 0.0  ;;  %v406_v52 = vsel %vm398_vm7, %v498_v41, 0.0  ;;  %v450_v20 = vmul.f32 32.0, %v492_v27  ;;  %v452_v22 = vmul.f32 32.0, %v494_v35 }
 0x124   :  { %v409_v49 = vadd.f32 %v408_v44, %v402_v46  ;;  %v413_v50 = vadd.f32 %v405_v48, %v404_v47  ;;  %v407_v55 = vsel %vm399_vm8, %v499_v45, 0.0  ;;  %v451_v25 = vmul.f32 32.0, %v493_v31 }
 0x125   :  { %v453_v26 = vmul.f32 32.0, %v495_v40  ;;  %v454_v31 = vmul.f32 32.0, %v496_v36  ;;  %v456_v38 = vmul.f32 32.0, %v498_v41  ;;  %v455_v40 = vmul.f32 32.0, %v497_v42 }
 0x126   :  { %v410_v53 = vadd.f32 %v409_v49, %v403_v51  ;;  %v414_v54 = vadd.f32 %v413_v50, %v406_v52  ;;  %v457_v44 = vmul.f32 32.0, %v499_v45 }
 0x128   :  { %411 = vadd.xlane.f32.xlu0 %v410_v53  ;;  %v415_v57 = vadd.f32 %v414_v54, %v407_v55 }
 0x12a   :  { %416 = vadd.xlane.f32.xlu1 %v415_v57 }
 0x1b5   :  { %v412_v58 = vpop.xlane.xlu0 %411 }
 0x1b6   :  { %v418_v59 = vmul.f32 %v412_v58, %v412_v58  ;;  %v438_v10 = vmul.f32 0.87758255, %v412_v58  ;;  %vm444_vm13 = vcmp.gt.f32.partialorder %v412_v58, -0.87758255 }
 0x1b7   :  { %v417_v60 = vpop.xlane.xlu1 %416 }
 0x1b8   :  { %v420_v61 = vsub.f32 1.0, %v418_v59  ;;  %v419_v62 = vmul.f32 %v417_v60, %v417_v60  ;;  %v439_v18 = vmul.f32 0.87758255, %v417_v60  ;;  %vm445_vm14 = vcmp.gt.f32.partialorder %v417_v60, -0.87758255 }
 0x1ba   :  { %v422_v63 = vmax.f32 %v420_v61, 0.0  ;;  %v421_v0 = vsub.f32 1.0, %v419_v62 }
 0x1bc   :  { %558 = vrsqrt.f32 %v422_v63  ;;  %v423_v3 = vmax.f32 %v421_v0, 0.0  ;;  %vm426_vm9 = vcmp.eq.f32.partialorder %v422_v63, inf  ;;  %v429_v6 = vand.u32 2147483648, %v422_v63 }
 0x1bd   :  { %vm428_vm10 = vcmp.eq.f32.partialorder %v422_v63, 0.0 }
 0x1be   :  { %560 = vrsqrt.f32 %v423_v3  ;;  %vm433_vm11 = vcmp.eq.f32.partialorder %v423_v3, inf  ;;  %v436_v13 = vand.u32 2147483648, %v423_v3  ;;  %vm435_vm12 = vcmp.eq.f32.partialorder %v423_v3, 0.0 }
 0x1c6   :  { %v559_v4 = vpop.eup %558 }
 0x1c7   :  { %v425_v5 = vmul.f32 %v559_v4, %v422_v63 }
 0x1c8   :  { %v561_v56 = vpop.eup %560 }
 0x1c9   :  { %v427_v7 = vsel %vm426_vm9, %v422_v63, %v425_v5  ;;  %v432_v9 = vmul.f32 %v561_v56, %v423_v3 }
 0x1ca   :  { %v430_v8 = vsel %vm428_vm10, %v429_v6, %v427_v7 }
 0x1cb   :  { %v440_v12 = vmul.f32 0.47942555, %v430_v8  ;;  %v434_v14 = vsel %vm433_vm11, %v423_v3, %v432_v9 }
 0x1cc   :  { %v437_v17 = vsel %vm435_vm12, %v436_v13, %v434_v14 }
 0x1cd   :  { %v442_v15 = vsub.f32 %v438_v10, %v440_v12  ;;  %v441_v19 = vmul.f32 0.47942555, %v437_v17 }
 0x1cf   :  { %v446_v24 = vsel %vm444_vm13, %v442_v15, %v412_v58  ;;  %v443_v30 = vsub.f32 %v439_v18, %v441_v19 }
 0x1d0   :  { %v448_v28 = vmul.f32 32.0, %v446_v24 }
 0x1d1   :  { %v447_v35 = vsel %vm445_vm14, %v443_v30, %v417_v60 }
 0x1d2   :  { %v458_v34 = vsel %vm392_vm1, %v448_v28, %v450_v20  ;;  %v459_v16 = vsel %vm393_vm2, %v448_v28, %v451_v25  ;;  %v460_v27 = vsel %vm394_vm3, %v448_v28, %v452_v22  ;;  %v461_v23 = vsel %vm395_vm6, %v448_v28, %v453_v26 }
 0x1d3   :  { %466 = vst [vmem:[#allocation2] sm:$0xff] %v458_v34  ;;  %467 = vst [vmem:[#allocation2 + $0x8] sm:$0xff] %v459_v16  ;;  %v449_v46 = vmul.f32 32.0, %v447_v35 }
 0x1d4   :  { %468 = vst [vmem:[#allocation2 + $0x10] sm:$0xff] %v460_v27  ;;  %469 = vst [vmem:[#allocation2 + $0x18] sm:$0xff] %v461_v23 }
 0x1d5   :  { %v462_v2 = vsel %vm396_vm4, %v449_v46, %v454_v31  ;;  %v463_v29 = vsel %vm397_vm5, %v449_v46, %v455_v40  ;;  %v464_v32 = vsel %vm398_vm7, %v449_v46, %v456_v38  ;;  %v465_v33 = vsel %vm399_vm8, %v449_v46, %v457_v44 }
 0x1d6   :  { %470 = vst [vmem:[#allocation2 + $0x20] sm:$0xff] %v462_v2  ;;  %471 = vst [vmem:[#allocation2 + $0x28] sm:$0xff] %v463_v29 }
 0x1d7   :  { %472 = vst [vmem:[#allocation2 + $0x30] sm:$0xff] %v464_v32  ;;  %473 = vst [vmem:[#allocation2 + $0x38] sm:$0xff] %v465_v33 }
 0x1d8   :  { %573 = shalt.err (!%p570_p4)
}
 0x1d9   :  { %s574_s30 = scalar_lea.hbm %s1019_s5, 1024 }
 0x1da   :  { %p575_p5 = scmp.ne.s32.totalorder %s1019_s5, %s574_s30  ;;  %p578_p6 = scmp.lt.u32.totalorder %s574_s30, %s1019_s5 }
 0x1dc   :  { %p580_p7 = pnand %p578_p6, %p575_p5 }
 0x1de   :  { %583 = shalt.err (!%p580_p7)
}
 0x1df   :  { %s588_s9 = smov 512   ;;  %s589_s10 = smov 32  }
 0x1e0   :  { %485 = dma.vmem_to_hbm [thread:$0]  %s480_s27, 1024, %s1019_s5, [#allocation3], %s588_s9, %s588_s9, %s589_s10  }
 0x1e1   :  { %584 = dma.done.wait [#allocation3], 1024  }
 0x1e2   :  { %585 = vsyncadd [#allocation3], 4294966272 }
 0x1e3   :  { %489 = vsyncpa [#allocation3], 1 }

</bundles_post_ra>
